<compile_context>
chip_gen: v7x
topology: tpu7x:2x2x1
jax: 0.10.0
libtpu: 0.0.40
codegen_flags: <defaults>
</compile_context>

<pallas_src>
import functools

import jax
import jax.numpy as jnp
from jax.experimental import pallas as pl
from jax.experimental.pallas import tpu as pltpu


def _sepconv_kernel(*refs, K, TL, BN, pad_l, pad_r, cdt, mxu_dt):
    """One (batch-block, L-tile) grid step.

    refs (K > 1): x_ref (BN, C_in, TL), halo_ref (1, BN, C_in, K-1),
                  dww_ref (C_in, K), pww_ref (C_out, C_in), b_ref (C_out, 1),
                  o_ref (BN, C_out, TL)
    refs (K == 1): same without halo_ref.
    """
    if K > 1:
        x_ref, halo_ref, dww_ref, pww_ref, b_ref, o_ref = refs
    else:
        x_ref, dww_ref, pww_ref, b_ref, o_ref = refs
        halo_ref = None

    dww = dww_ref[...].astype(cdt)                      # (C_in, K)
    pww = pww_ref[...].astype(mxu_dt)                   # (C_out, C_in)
    bias = b_ref[...].astype(jnp.float32)               # (C_out, 1)

    w_col = [dww[:, k:k + 1] for k in range(K)]         # per-tap (C_in, 1)

    if K > 1:
        lanes = jax.lax.broadcasted_iota(jnp.int32, (1, TL), 1)
        halo_all = halo_ref[0]                          # (BN, C_in, K-1)

    for b in range(BN):                                 # BN is small; unrolled
        xb = x_ref[b].astype(cdt)                       # (C_in, TL)

        # Depthwise bulk: circular taps via XLU roll on the 128-aligned tile.
        # Only the first pad_l / last pad_r lanes pick up wrapped (wrong)
        # values; those few lanes are overwritten with exact values below.
        acc = w_col[pad_l] * xb
        for k in range(K):
            if k == pad_l:
                continue
            s = k - pad_l                               # tap shift in [-pad_l, pad_r]
            acc = acc + w_col[k] * pltpu.roll(xb, shift=(-s) % TL, axis=1)

        if K > 1:
            hl = halo_all[b].astype(cdt)                # (C_in, K-1)
            if pad_l > 0:
                # Exact left-boundary window: [left halo | first K-1 tile cols]
                lw = jnp.concatenate([hl[:, 0:pad_l], xb[:, 0:K - 1]], axis=1)
                dl = w_col[0] * lw[:, 0:pad_l]
                for k in range(1, K):
                    dl = dl + w_col[k] * lw[:, k:k + pad_l]
                for j in range(pad_l):
                    acc = jnp.where(lanes == j, dl[:, j:j + 1], acc)
            if pad_r > 0:
                # Exact right-boundary window: [last K-1 tile cols | right halo]
                rw = jnp.concatenate([xb[:, TL - (K - 1):TL],
                                      hl[:, pad_l:K - 1]], axis=1)
                dr = w_col[0] * rw[:, 0:pad_r]
                for k in range(1, K):
                    dr = dr + w_col[k] * rw[:, k:k + pad_r]
                for j in range(pad_r):
                    acc = jnp.where(lanes == TL - pad_r + j, dr[:, j:j + 1], acc)

        # Pointwise (1x1) conv == channel matmul on the MXU, fused bias add.
        out = jnp.dot(pww, acc.astype(mxu_dt),
                      preferred_element_type=jnp.float32) + bias
        o_ref[b] = out.astype(o_ref.dtype)


def _vmem_config():
    """(device_kind, per-step VMEM budget, vmem_limit_bytes), generation aware."""
    kind = ""
    try:
        kind = jax.devices()[0].device_kind.lower()
    except Exception:
        pass
    if any(t in kind for t in ("v4", "v5", "v6")):       # 128 MiB VMEM parts
        return kind, 16 * 1024 * 1024, 64 * 1024 * 1024
    # v7x has 64 MiB VMEM; unknown devices also get the conservative setting.
    return kind, 8 * 1024 * 1024, 40 * 1024 * 1024


def _select_dtypes(x_dtype, w_dtype, device_kind):
    """Depthwise-tap (VPU) compute dtype and MXU operand dtype."""
    if x_dtype == jnp.bfloat16 and w_dtype == jnp.bfloat16:
        mxu_dt = jnp.bfloat16
        # v5e has no bf16 VPU: keep the tap math in f32 there.
        bf16_vpu = ("v6" in device_kind) or ("v7" in device_kind)
        cdt = jnp.bfloat16 if bf16_vpu else jnp.float32
    else:
        mxu_dt = jnp.float32
        cdt = jnp.float32
    return cdt, mxu_dt


def _choose_tiles(N, C_in, C_out, L, K, itemsize, budget):
    """Pick (BN, TL, T, Lp): batch block, lane tile, tile count, padded L."""

    def fits(tl, bn):
        pipe = 2 * bn * (C_in + C_out) * tl * itemsize   # double-buffered blocks
        temp = 4 * bn * (3 * C_in + 2 * C_out) * tl      # f32 in-kernel temporaries
        return pipe + temp <= budget

    # Largest lane-group count per step that fits the budget (TL <= 8192).
    nl = pl.cdiv(L, 128)                                 # lane groups covering L
    max_groups = 1
    for g in range(1, 65):
        if fits(g * 128, 1):
            max_groups = g
        else:
            break
    T = pl.cdiv(nl, max_groups)                          # number of L tiles
    TL = pl.cdiv(nl, T) * 128                            # balanced, 128-multiple
    Lp = T * TL

    # Batch block: biggest divisor of N that fits the budget; if the L axis has
    # only one tile, keep >= 2 grid points on the batch axis (v7x megacore).
    BN = 1
    for bn in (32, 16, 8, 4, 2):
        if bn > N or N % bn != 0 or not fits(TL, bn):
            continue
        if T == 1 and N >= 2 and N // bn < 2:
            continue
        BN = bn
        break
    return BN, TL, T, Lp


def _build_halo(x, T, TL, pad_l, pad_r):
    """(T, N, C_in, K-1): for tile t, the pad_l columns to its left and the
    pad_r columns to its right (zeros past the row ends).  Tiny vs x, so no
    full zero-padding pass over x is needed."""
    N, C_in, _ = x.shape
    K1 = pad_l + pad_r
    dt = x.dtype
    if T == 1:
        return jnp.zeros((1, N, C_in, K1), dt)
    xr = x.reshape(N, C_in, T, TL)
    parts = []
    if pad_l > 0:
        lh = jnp.moveaxis(xr[:, :, :T - 1, TL - pad_l:], 2, 0)   # (T-1,N,C,pad_l)
        lh = jnp.concatenate([jnp.zeros((1, N, C_in, pad_l), dt), lh], axis=0)
        parts.append(lh)
    if pad_r > 0:
        rh = jnp.moveaxis(xr[:, :, 1:, :pad_r], 2, 0)            # (T-1,N,C,pad_r)
        rh = jnp.concatenate([rh, jnp.zeros((1, N, C_in, pad_r), dt)], axis=0)
        parts.append(rh)
    return parts[0] if len(parts) == 1 else jnp.concatenate(parts, axis=-1)


def seperable_conv1d(x, dw_w, dw_b, pw_w, pw_b):
    """x: (N, C_in, L); dw_w: (C_in, K); dw_b: (C_in,);
       pw_w: (C_out, C_in); pw_b: (C_out,)  ->  (N, C_out, L)."""
    N, C_in, L = x.shape
    C_out = pw_w.shape[0]
    K = dw_w.shape[1]

    # PyTorch padding='same': total = K-1, left = total // 2, rest on the right.
    pad_l = (K - 1) // 2
    pad_r = (K - 1) - pad_l

    kind, budget, vmem_limit = _vmem_config()
    BN, TL, T, Lp = _choose_tiles(N, C_in, C_out, L, K, x.dtype.itemsize, budget)
    if K - 1 > TL:
        raise NotImplementedError("kernel_size larger than the lane tile")

    cdt, mxu_dt = _select_dtypes(x.dtype, pw_w.dtype, kind)

    x_run = x if Lp == L else jnp.pad(x, ((0, 0), (0, 0), (0, Lp - L)))

    # Fold the depthwise bias into the pointwise bias:
    #   pw_w @ (dwconv(x) + dw_b) + pw_b == pw_w @ dwconv(x) + (pw_w @ dw_b + pw_b)
    b_fused = (jnp.dot(pw_w.astype(jnp.float32), dw_b.astype(jnp.float32)[:, None])
               + pw_b.astype(jnp.float32)[:, None])               # (C_out, 1)

    kernel = functools.partial(_sepconv_kernel, K=K, TL=TL, BN=BN,
                               pad_l=pad_l, pad_r=pad_r, cdt=cdt, mxu_dt=mxu_dt)

    in_specs = [pl.BlockSpec((BN, C_in, TL), lambda nb, t: (nb, 0, t))]
    operands = [x_run]
    if K > 1:
        halo = _build_halo(x_run, T, TL, pad_l, pad_r)            # (T,N,C_in,K-1)
        in_specs.append(pl.BlockSpec((1, BN, C_in, K - 1),
                                     lambda nb, t: (t, nb, 0, 0)))
        operands.append(halo)
    in_specs += [
        pl.BlockSpec((C_in, K), lambda nb, t: (0, 0)),
        pl.BlockSpec((C_out, C_in), lambda nb, t: (0, 0)),
        pl.BlockSpec((C_out, 1), lambda nb, t: (0, 0)),
    ]
    operands += [dw_w, pw_w, b_fused]

    out = pl.pallas_call(
        kernel,
        out_shape=jax.ShapeDtypeStruct((N, C_out, Lp), x.dtype),
        grid=(N // BN, T),
        in_specs=in_specs,
        out_specs=pl.BlockSpec((BN, C_out, TL), lambda nb, t: (nb, 0, t)),
        compiler_params=pltpu.CompilerParams(
            dimension_semantics=("parallel", "parallel"),
            vmem_limit_bytes=vmem_limit,
        ),
    )(*operands)

    return out if Lp == L else out[:, :, :L]


def _reference(x, dw_w, dw_b, pw_w, pw_b):
    """Pure-JAX reference mirroring PyTorch Conv1d 'same' semantics."""
    N, C_in, L = x.shape
    K = dw_w.shape[1]
    pad_l = (K - 1) // 2
    xp = jnp.pad(x, ((0, 0), (0, 0), (pad_l, (K - 1) - pad_l)))
    dw = jnp.zeros((N, C_in, L), jnp.float32)
    for k in range(K):
        dw = dw + dw_w[None, :, k:k + 1] * xp[:, :, k:k + L]
    dw = dw + dw_b[None, :, None]
    out = jnp.einsum('oc,ncl->nol', pw_w.astype(jnp.float32), dw) \
        + pw_b[None, :, None]
    return out.astype(x.dtype)


def _run_case(key, N, C_in, C_out, L, K, atol):
    kx, k1, k2, k3, k4 = jax.random.split(key, 5)
    x = jax.random.normal(kx, (N, C_in, L), dtype=jnp.float32)
    # Parameter shapes implied by nn.Conv1d:
    #   depthwise: weight (C_in, 1, K) -> stored here as (C_in, K), bias (C_in,)
    #   pointwise: weight (C_out, C_in, 1) -> stored as (C_out, C_in), bias (C_out,)
    dw_w = jax.random.normal(k1, (C_in, K), dtype=jnp.float32) * 0.1
    dw_b = jax.random.normal(k2, (C_in,), dtype=jnp.float32) * 0.1
    pw_w = jax.random.normal(k3, (C_out, C_in), dtype=jnp.float32) * 0.1
    pw_b = jax.random.normal(k4, (C_out,), dtype=jnp.float32) * 0.1

    out = jax.block_until_ready(seperable_conv1d(x, dw_w, dw_b, pw_w, pw_b))
    ref = _reference(x, dw_w, dw_b, pw_w, pw_b)
    assert out.shape == (N, C_out, L)
    assert jnp.allclose(out, ref, atol=atol, rtol=1e-4), \
        float(jnp.max(jnp.abs(out - ref)))


if __name__ == "__main__":
    key = jax.random.PRNGKey(0)
    k0, k1, k2 = jax.random.split(key, 3)
    # Small shapes implied by the module: padded-to-128 lane-dense path, K=3.
    _run_case(k0, N=2, C_in=4, C_out=8, L=16, K=3, atol=1e-4)
    # Non-multiple-of-128 length and K=5 (pad_l = pad_r = 2 boundary patching).
    _run_case(k1, N=2, C_in=8, C_out=16, L=300, K=5, atol=1e-4)
    # Long sequence: multi-tile path with inter-tile halo and batch block BN=2.
    _run_case(k2, N=2, C_in=8, C_out=16, L=9000, K=3, atol=1e-4)
    print("KERNEL_OK")
</pallas_src>

<mosaic_0001>
module attributes {stable_mosaic.version = 11 : i64} {
  func.func @_sepconv_kernel(%arg0: i32, %arg1: i32, %arg2: memref<1x4x128xf32, #tpu.memory_space<vmem>>, %arg3: memref<1x1x4x2xf32, #tpu.memory_space<vmem>>, %arg4: memref<4x3xf32, #tpu.memory_space<vmem>>, %arg5: memref<8x4xf32, #tpu.memory_space<vmem>>, %arg6: memref<8x1xf32, #tpu.memory_space<vmem>>, %arg7: memref<1x8x128xf32, #tpu.memory_space<vmem>>) attributes {dimension_semantics = [#tpu.dimension_semantics<parallel>, #tpu.dimension_semantics<parallel>], iteration_bounds = array<i64: 2, 1>, scalar_prefetch = 0 : i64, scratch_operands = 0 : i64, tpu.core_type = #tpu.core_type<tc>, window_params = [{transform_indices = @transform_0, window_bounds = array<i64: 1, 4, 128>}, {transform_indices = @transform_1, window_bounds = array<i64: 1, 1, 4, 2>}, {pipeline_mode = #tpu.pipeline_mode<synchronous>, transform_indices = @transform_2, window_bounds = array<i64: 4, 3>}, {pipeline_mode = #tpu.pipeline_mode<synchronous>, transform_indices = @transform_3, window_bounds = array<i64: 8, 4>}, {pipeline_mode = #tpu.pipeline_mode<synchronous>, transform_indices = @transform_4, window_bounds = array<i64: 8, 1>}, {transform_indices = @transform_5, window_bounds = array<i64: 1, 8, 128>}]} {
    %c0 = arith.constant 0 : index
    %c0_0 = arith.constant 0 : index
    %0 = vector.load %arg4[%c0, %c0_0] : memref<4x3xf32, #tpu.memory_space<vmem>>, vector<4x3xf32>
    %c0_1 = arith.constant 0 : index
    %c0_2 = arith.constant 0 : index
    %1 = vector.load %arg5[%c0_1, %c0_2] : memref<8x4xf32, #tpu.memory_space<vmem>>, vector<8x4xf32>
    %c0_3 = arith.constant 0 : index
    %c0_4 = arith.constant 0 : index
    %2 = vector.load %arg6[%c0_3, %c0_4] : memref<8x1xf32, #tpu.memory_space<vmem>>, vector<8x1xf32>
    %3 = vector.extract_strided_slice %0 {offsets = [0, 0], sizes = [4, 1], strides = [1, 1]} : vector<4x3xf32> to vector<4x1xf32>
    %4 = vector.extract_strided_slice %0 {offsets = [0, 1], sizes = [4, 1], strides = [1, 1]} : vector<4x3xf32> to vector<4x1xf32>
    %5 = vector.extract_strided_slice %0 {offsets = [0, 2], sizes = [4, 1], strides = [1, 1]} : vector<4x3xf32> to vector<4x1xf32>
    %6 = tpu.iota {dimensions = array<i32: 1>} : vector<1x128xi32>
    %c0_5 = arith.constant 0 : index
    %c0_6 = arith.constant 0 : index
    %c0_7 = arith.constant 0 : index
    %c0_8 = arith.constant 0 : index
    %7 = vector.load %arg3[%c0_5, %c0_6, %c0_7, %c0_8] : memref<1x1x4x2xf32, #tpu.memory_space<vmem>>, vector<1x1x4x2xf32>
    %8 = vector.shape_cast %7 : vector<1x1x4x2xf32> to vector<1x4x2xf32>
    %c0_9 = arith.constant 0 : index
    %c0_10 = arith.constant 0 : index
    %c0_11 = arith.constant 0 : index
    %9 = vector.load %arg2[%c0_9, %c0_10, %c0_11] : memref<1x4x128xf32, #tpu.memory_space<vmem>>, vector<1x4x128xf32>
    %10 = vector.shape_cast %9 : vector<1x4x128xf32> to vector<4x128xf32>
    %11 = vector.broadcast %4 : vector<4x1xf32> to vector<4x128xf32>
    %12 = arith.mulf %11, %10 : vector<4x128xf32>
    %c1_i32 = arith.constant 1 : i32
    %13 = tpu.dynamic_rotate %10 by %c1_i32 dim 1 : vector<4x128xf32>, i32 -> vector<4x128xf32>
    %14 = vector.broadcast %3 : vector<4x1xf32> to vector<4x128xf32>
    %15 = arith.mulf %14, %13 : vector<4x128xf32>
    %16 = arith.addf %12, %15 : vector<4x128xf32>
    %c127_i32 = arith.constant 127 : i32
    %17 = tpu.dynamic_rotate %10 by %c127_i32 dim 1 : vector<4x128xf32>, i32 -> vector<4x128xf32>
    %18 = vector.broadcast %5 : vector<4x1xf32> to vector<4x128xf32>
    %19 = arith.mulf %18, %17 : vector<4x128xf32>
    %20 = arith.addf %16, %19 : vector<4x128xf32>
    %21 = vector.shape_cast %8 : vector<1x4x2xf32> to vector<4x2xf32>
    %22 = vector.extract_strided_slice %21 {offsets = [0, 0], sizes = [4, 1], strides = [1, 1]} : vector<4x2xf32> to vector<4x1xf32>
    %23 = vector.extract_strided_slice %10 {offsets = [0, 0], sizes = [4, 2], strides = [1, 1]} : vector<4x128xf32> to vector<4x2xf32>
    %24 = tpu.concatenate %22, %23 in 1 : vector<4x1xf32>, vector<4x2xf32> -> vector<4x3xf32>
    %25 = vector.extract_strided_slice %24 {offsets = [0, 0], sizes = [4, 1], strides = [1, 1]} : vector<4x3xf32> to vector<4x1xf32>
    %26 = arith.mulf %3, %25 : vector<4x1xf32>
    %27 = vector.extract_strided_slice %24 {offsets = [0, 1], sizes = [4, 1], strides = [1, 1]} : vector<4x3xf32> to vector<4x1xf32>
    %28 = arith.mulf %4, %27 : vector<4x1xf32>
    %29 = arith.addf %26, %28 : vector<4x1xf32>
    %30 = vector.extract_strided_slice %24 {offsets = [0, 2], sizes = [4, 1], strides = [1, 1]} : vector<4x3xf32> to vector<4x1xf32>
    %31 = arith.mulf %5, %30 : vector<4x1xf32>
    %32 = arith.addf %29, %31 : vector<4x1xf32>
    %c0_i32 = arith.constant 0 : i32
    %33 = vector.broadcast %c0_i32 : i32 to vector<1x128xi32>
    %34 = arith.cmpi eq, %6, %33 : vector<1x128xi32>
    %35 = vector.shape_cast %34 : vector<1x128xi1> to vector<1x128xi1>
    %36 = vector.broadcast %35 : vector<1x128xi1> to vector<4x128xi1>
    %37 = vector.shape_cast %32 : vector<4x1xf32> to vector<4x1xf32>
    %38 = vector.broadcast %37 : vector<4x1xf32> to vector<4x128xf32>
    %39 = arith.select %36, %38, %20 : vector<4x128xi1>, vector<4x128xf32>
    %40 = vector.extract_strided_slice %10 {offsets = [0, 126], sizes = [4, 2], strides = [1, 1]} : vector<4x128xf32> to vector<4x2xf32>
    %41 = vector.extract_strided_slice %21 {offsets = [0, 1], sizes = [4, 1], strides = [1, 1]} : vector<4x2xf32> to vector<4x1xf32>
    %42 = tpu.concatenate %40, %41 in 1 : vector<4x2xf32>, vector<4x1xf32> -> vector<4x3xf32>
    %43 = vector.extract_strided_slice %42 {offsets = [0, 0], sizes = [4, 1], strides = [1, 1]} : vector<4x3xf32> to vector<4x1xf32>
    %44 = arith.mulf %3, %43 : vector<4x1xf32>
    %45 = vector.extract_strided_slice %42 {offsets = [0, 1], sizes = [4, 1], strides = [1, 1]} : vector<4x3xf32> to vector<4x1xf32>
    %46 = arith.mulf %4, %45 : vector<4x1xf32>
    %47 = arith.addf %44, %46 : vector<4x1xf32>
    %48 = vector.extract_strided_slice %42 {offsets = [0, 2], sizes = [4, 1], strides = [1, 1]} : vector<4x3xf32> to vector<4x1xf32>
    %49 = arith.mulf %5, %48 : vector<4x1xf32>
    %50 = arith.addf %47, %49 : vector<4x1xf32>
    %c127_i32_12 = arith.constant 127 : i32
    %51 = vector.broadcast %c127_i32_12 : i32 to vector<1x128xi32>
    %52 = arith.cmpi eq, %6, %51 : vector<1x128xi32>
    %53 = vector.shape_cast %52 : vector<1x128xi1> to vector<1x128xi1>
    %54 = vector.broadcast %53 : vector<1x128xi1> to vector<4x128xi1>
    %55 = vector.shape_cast %50 : vector<4x1xf32> to vector<4x1xf32>
    %56 = vector.broadcast %55 : vector<4x1xf32> to vector<4x128xf32>
    %57 = arith.select %54, %56, %39 : vector<4x128xi1>, vector<4x128xf32>
    %cst = arith.constant dense<0.000000e+00> : vector<8x128xf32>
    %58 = tpu.matmul %1, %57, %cst {dimension_numbers = #tpu.dot_dimension_numbers<[1], [0], [0], [1], [0, 0, 1, 1], [], []>} : vector<8x4xf32>, vector<4x128xf32>, vector<8x128xf32> -> vector<8x128xf32>
    %59 = vector.broadcast %2 : vector<8x1xf32> to vector<8x128xf32>
    %60 = arith.addf %58, %59 : vector<8x128xf32>
    %c0_13 = arith.constant 0 : index
    %c0_14 = arith.constant 0 : index
    %c0_15 = arith.constant 0 : index
    %61 = vector.load %arg7[%c0_13, %c0_14, %c0_15] : memref<1x8x128xf32, #tpu.memory_space<vmem>>, vector<1x8x128xf32>
    %62 = vector.shape_cast %61 : vector<1x8x128xf32> to vector<8x128xf32>
    %63 = vector.shape_cast %60 : vector<8x128xf32> to vector<1x8x128xf32>
    tpu.vector_store %arg7[%c0_13, %c0_14, %c0_15], %63 {strides = array<i32>} : memref<1x8x128xf32, #tpu.memory_space<vmem>>, vector<1x8x128xf32>,
    return
  }
  func.func @transform_0(%arg0: i32, %arg1: i32) -> (i32, i32, i32) {
    %c0_i32 = arith.constant 0 : i32
    %c0_i32_0 = arith.constant 0 : i32
    return %arg0, %c0_i32, %arg1 : i32, i32, i32
  }
  func.func @transform_1(%arg0: i32, %arg1: i32) -> (i32, i32, i32, i32) {
    %c0_i32 = arith.constant 0 : i32
    %c0_i32_0 = arith.constant 0 : i32
    %c0_i32_1 = arith.constant 0 : i32
    return %arg1, %arg0, %c0_i32, %c0_i32_0 : i32, i32, i32, i32
  }
  func.func @transform_2(%arg0: i32, %arg1: i32) -> (i32, i32) {
    %c0_i32 = arith.constant 0 : i32
    %c0_i32_0 = arith.constant 0 : i32
    %c0_i32_1 = arith.constant 0 : i32
    return %c0_i32, %c0_i32_0 : i32, i32
  }
  func.func @transform_3(%arg0: i32, %arg1: i32) -> (i32, i32) {
    %c0_i32 = arith.constant 0 : i32
    %c0_i32_0 = arith.constant 0 : i32
    %c0_i32_1 = arith.constant 0 : i32
    return %c0_i32, %c0_i32_0 : i32, i32
  }
  func.func @transform_4(%arg0: i32, %arg1: i32) -> (i32, i32) {
    %c0_i32 = arith.constant 0 : i32
    %c0_i32_0 = arith.constant 0 : i32
    %c0_i32_1 = arith.constant 0 : i32
    return %c0_i32, %c0_i32_0 : i32, i32
  }
  func.func @transform_5(%arg0: i32, %arg1: i32) -> (i32, i32, i32) {
    %c0_i32 = arith.constant 0 : i32
    %c0_i32_0 = arith.constant 0 : i32
    return %arg0, %c0_i32, %arg1 : i32, i32, i32
  }
}

</mosaic_0001>

<bundles_post_ra>
// kernel: tpu_custom_call.1
= control target key start
LH: loop header
LB: loop body
LE: loop exit
PB: predicated region body
PF: predicated region fallthrough
CT: control target
= control target key end

     0   :  { %10 = vsyncpa [#allocation3], 0  ;;  %s879_s0 = inlined_call_operand.vmem [shape: f32[2,4,128], index: 0, kind: input, shape index: {}]   ;;  %s880_s1 = inlined_call_operand.vmem [shape: f32[1,2,4,2], index: 1, kind: input, shape index: {}]   ;;  %s881_s2 = inlined_call_operand.vmem [shape: f32[4,3], index: 2, kind: input, shape index: {}]   ;;  %s882_s3 = inlined_call_operand.vmem [shape: f32[8,4], index: 3, kind: input, shape index: {}]   ;;  %s883_s4 = inlined_call_operand.vmem [shape: f32[8,1], index: 4, kind: input, shape index: {}]   ;;  %s884_s5 = inlined_call_operand.hbm [shape: f32[2,8,128], index: 5, kind: output, shape index: {}]  }
   0x1   :  { %12 = vsyncpa [#allocation3 + $0x1], 0  ;;  %s755_s18 = smov 0   ;;  %s757_s19 = smov 0  }
   0x2   :  { %s759_s20 = smov 0   ;;  %s761_s21 = smov 0  }
   0x3   :  { %s763_s22 = smov 0   ;;  %s765_s23 = smov 0  }
   0x4 LB: > { %s546_s24 = sadd.s32 4294967295, %s713_s23   ;;  %s547_s25 = sadd.s32 4294967294, %s713_s23   ;;  %s713_s23 = sphi %s765_s23, %s18_s23   ;;  %s709_s22 = sphi %s763_s22, %s891_s22   ;;  %s705_s21 = sphi %s761_s21, %s890_s21   ;;  %s701_s20 = sphi %s759_s20, %s889_s20   ;;  %s697_s19 = sphi %s757_s19, %s888_s19   ;;  %s693_s18 = sphi %s755_s18, %s887_s18  }
   0x5   : > { %s30_s26 = sadd.s32 1, %s709_s22  ;;  %s158_s27 = sadd.s32 1, %s701_s20 }
   0x6   : > { %p32_p0 = scmp.ge.s32.totalorder %s30_s26, 2  ;;  %p168_p1 = scmp.ne.s32.totalorder %s701_s20, %s697_s19 }
   0x7   : > { %p169_p2 = scmp.eq.s32.totalorder %s546_s24, 1  ;;  %p174_p3 = scmp.ne.s32.totalorder %s697_s19, %s693_s18 }
   0x8   : > { %s893_s26 = smov (%p32_p0, %s30_s26), 0  ;;  %p175_p5 = scmp.eq.s32.totalorder %s547_s25, 1 }
   0x9   : > { %p795_p4 = por %p169_p2, %p168_p1  ;;  %s153_s29 = ssub.s32 %s709_s22, %s893_s26 }
   0xa   : > { %p550_p6 = scmp.ge.s32.totalorder %s713_s23, 1  ;;  %p156_p7 = scmp.eq.s32.totalorder %s153_s29, 0 }
   0xb   : > { %p802_p8 = por %p175_p5, %p174_p3  ;;  %p223_p9 = scmp.lt.s32.totalorder %s713_s23, 3 }
   0xc   : > { %s808_s6 = scalar_select %p156_p7, %s701_s20, %s158_s27  }
   0xd   : > { %p224_p10 = pnand %p550_p6, %p223_p9 }
   0xe   : > { %p261_p11 = scmp.lt.s32.totalorder (!%p224_p10), %s705_s21, 1  ;;  %v715_v2 = vmov (!%p224_p10), 0   ;;  %s716_s15 = smov (!%p224_p10), 1   ;;  %v717_v3 = vmov (!%p224_p10), 1   ;;  %vm309_vm0 = vcmask (!%p224_p10), 7168   ;;  %vm337_vm1 = vcmask (!%p224_p10), 15360  }
   0xf   : > { %227 = sbr.rel (%p224_p10) target bundleno = 628 (0x274), region = 40  ;;  %632 = vset.pattern.permute.xlu0 (!%p224_p10), %v715_v2  ;;  %631 = vset.pattern.permute.xlu1 (!%p224_p10), %v717_v3  ;;  %s718_s16 = smov (!%p224_p10), 2   ;;  %v276_v4 = vld [vmem:[%s881_s2] sm:$0xf] (!%p224_p10)  ;;  %v721_v12 = vmov (!%p224_p10), 2   ;;  %v722_v21 = vmov (!%p224_p10), 0.0   ;;  %v279_v26 = vlaneseq (!%p224_p10) }
  0x10   : > { %s719_s25 = smov (!%p224_p10), 127   ;;  %s720_s27 = smov (!%p224_p10), 126   ;;  %562 = vmatprep.subr.mxu0 (!%p224_p10), %v722_v21  ;;  %v278_v22 = vld [vmem:[%s883_s4] sm:$0xff] (!%p224_p10)  ;;  %vm723_vm2 = vmmov (!%p224_p10), 0   ;;  %vm367_vm5 = vcmask (!%p224_p10), 1043456   ;;  %vm363_vm6 = vcmask (!%p224_p10), 31744  }
  0x11   : > { %564 = vmatprep.mubr.msk.f32.mxu0 (!%p224_p10), %vm723_vm2, %v722_v21  ;;  %v280_v31 = vand.u32 (!%p224_p10), 127, %v279_v26  ;;  %v277_v38 = vld [vmem:[%s882_s3] sm:$0xff] (!%p224_p10)  ;;  %s258_s10 = sand.u32 (!%p224_p10), 1, %s697_s19   ;;  %s557_s12 = sshll.u32 (!%p224_p10), %s705_s21, 7 }
  0x12   : > { %s832_s17 = scalar_lea.hbm (!%p224_p10), %s884_s5, %s557_s12  ;;  %s443_s24 = scalar_lea.sflag (!%p224_p10), [#allocation3], %s258_s10 }
  0x13   : > { %vm321_vm3 = vcmp.eq.s32.totalorder (!%p224_p10), %v280_v31, 0  ;;  %vm349_vm4 = vcmp.eq.s32.totalorder (!%p224_p10), %v280_v31, 127 }
  0x16   : > { %s262_s7 = scalar_select %p261_p11, %s705_s21, 1 }
  0x17   : > { %s724_s21 = smov [#allocation2]  }
  0x18   : > { %s552_s8 = sshll.u32 %s262_s7, 2 }
  0x19   : > { %s267_s11 = scalar_lea.vmem %s879_s0, %s552_s8  ;;  %s275_s14 = scalar_lea.vmem %s880_s1, %s552_s8 }
  0x1a   : > { %v282_v0 = vld [vmem:[%s267_s11] sm:$0xf]  ;;  %s551_s11 = sshll.u32 %s258_s10, 3 }
  0x1b   : > { %v281_v1 = vld [vmem:[%s275_s14] sm:$0xf]  ;;  %306 = vrot.lane.b32.xlu0 %v282_v0, %s716_s15  ;;  %s260_s13 = scalar_lea.vmem [#allocation2], %s551_s11 }
  0x1c   : > { %334 = vrot.lane.b32.xlu1 %v281_v1, %s716_s15  ;;  %s457_s14 = sshll.u32 %s260_s13, 4  ;;  %s834_s14 = int_to_ptr.vmem [resolvable:$true] %s457_s14 }
  0x1f   : > { %330 = vrot.lane.b32.xlu0 %v282_v0, %s718_s16 }
  0x8d   : > { %v307_v5 = vpop.permute.xlu0 %306 }
  0x8e   : > { %v310_v6 = vsel %vm309_vm0, %v281_v1, %v307_v5  ;;  %v335_v8 = vpop.permute.xlu1 %334 }
  0x8f   : > { %v311_v7 = vmul.f32 %v310_v6, %v276_v4 }
  0x91   : > { %313 = vrot.lane.b32.xlu1 %v311_v7, %s719_s25  ;;  %v331_v9 = vpop.permute.xlu0 %330 }
  0x92   : > { %v338_v10 = vsel %vm337_vm1, %v331_v9, %v335_v8 }
  0x93   : > { %v339_v11 = vmul.f32 %v338_v10, %v276_v4 }
  0x95   : > { %317 = vrot.lane.b32.xlu1 %v311_v7, %s720_s27  ;;  %341 = vrot.lane.b32.xlu0 %v339_v11, %s719_s25 }
  0x99   : > { %345 = vrot.lane.b32.xlu0 %v339_v11, %s720_s27  ;;  %285 = vperm.xlu1 %631, %v276_v4   ;;  %s639_s27 = sshll.u32 %s724_s21, 4  ;;  %s640_s27 = int_to_ptr.vmem [resolvable:$false] %s639_s27 }
  0x9a   : > { %s641_s29 = scalar_lea.vmem %s640_s27, 256  ;;  %p642_p1 = scmp.lt.s32.totalorder %s834_s14, %s640_s27 }
  0x9d   : > { %292 = vperm.xlu0 %632, %v276_v4   ;;  %633 = vset.pattern.permute.xlu1 %v721_v12 }
  0x9e   : > { %300 = vperm.xlu1 %633, %v276_v4  }
  0xa1   : > { %289 = vrot.lane.b32.xlu0 %v282_v0, %s716_s15 }
  0xa2   : > { %634 = vset.pattern.permute.xlu1 %v715_v2 }
  0xa5   : > { %297 = vrot.lane.b32.xlu0 %v282_v0, %s719_s25  ;;  %s635_s25 = scalar_lea.vmem %s834_s14, 128 }
  0xa6   : > { %p636_p12 = scmp.ne.s32.totalorder %s834_s14, %s635_s25  ;;  %p643_p2 = scmp.lt.s32.totalorder %s641_s29, %s635_s25 }
  0xa8   : > { %p637_p13 = pnand %p636_p12, %p795_p4  ;;  %p644_p3 = por %p643_p2, %p642_p1 }
  0xaa   : > { %p638_p0 = pneg %p637_p13 }
  0xac   : > { %p645_p5 = pnand %p644_p3, %p638_p0 }
 0x103   : > { %v314_v13 = vpop.permute.xlu1 %313 }
 0x104   : > { %v316_v14 = vadd.f32 %v314_v13, %v311_v7 }
 0x107   : > { %v318_v15 = vpop.permute.xlu1 %317  ;;  %v342_v16 = vpop.permute.xlu0 %341 }
 0x108   : > { %v320_v17 = vadd.f32 %v318_v15, %v316_v14  ;;  %v344_v18 = vadd.f32 %v342_v16, %v339_v11 }
 0x10a   : > { %326 = vperm.xlu1 %634, %v320_v17  }
 0x10b   : > { %v346_v19 = vpop.permute.xlu0 %345 }
 0x10c   : > { %v348_v20 = vadd.f32 %v346_v19, %v344_v18 }
 0x10e   : > { %354 = vperm.xlu1 %634, %v348_v20  }
 0x112   : > { %360 = vperm.xlu1 %634, %v278_v22  }
 0x118   : > { %v286_v24 = vpop.permute.xlu1 %285 }
 0x119   : > { %v288_v27 = vmul.f32 %v286_v24, %v282_v0 }
 0x11c   : > { %v293_v23 = vpop.permute.xlu0 %292 }
 0x11d   : > { %v301_v29 = vpop.permute.xlu1 %300 }
 0x120   : > { %v290_v25 = vpop.permute.xlu0 %289 }
 0x121   : > { %v295_v28 = vmul.f32 %v293_v23, %v290_v25 }
 0x123   : > { %v296_v32 = vadd.f32 %v295_v28, %v288_v27 }
 0x124   : > { %v298_v30 = vpop.permute.xlu0 %297 }
 0x125   : > { %v303_v33 = vmul.f32 %v301_v29, %v298_v30 }
 0x127   : > { %v304_v35 = vadd.f32 %v303_v33, %v296_v32 }
 0x189   : > { %v327_v34 = vpop.permute.xlu1 %326 }
 0x18a   : > { %v329_v36 = vsel %vm321_vm3, %v327_v34, %v304_v35 }
 0x18d   : > { %v355_v37 = vpop.permute.xlu1 %354 }
 0x18e   : > { %v357_v39 = vsel %vm349_vm4, %v355_v37, %v329_v36 }
 0x18f   : > { %563 = vmatpush3.msk.msra.mxu0 %vm367_vm5, %v357_v39 }
 0x190   : > { %565 = vmatmul.mubr.msk.f32.vlgmr.msra.gmra.mrb[0].mxu0 %vm363_vm6, %v277_v38 }
 0x191   : > { %v361_v40 = vpop.permute.xlu1 %360 }
 0x263   : > { %v437_v41 = vpop.f32.mrb[0].mxu0 }
 0x264   : > { %v438_v42 = vadd.f32 %v437_v41, %v361_v40  ;;  %v566_v43 = vpop.f32.mrb[1].mxu0 }
 0x266   : > { %441 = vst [vmem:[%s260_s13] sm:$0xff] %v438_v42 }
 0x267   : > { %648 = shalt.err (!%p645_p5)
}
 0x268   : > { %s649_s7 = scalar_lea.hbm %s832_s17, 128  ;;  %s653_s10 = scalar_lea.hbm %s884_s5, 256 }
 0x269   : > { %p650_p6 = scmp.ne.s32.totalorder %s832_s17, %s649_s7  ;;  %p654_p10 = scmp.lt.u32.totalorder %s832_s17, %s884_s5 }
 0x26a   : > { %p655_p11 = scmp.lt.u32.totalorder %s653_s10, %s649_s7  ;;  %p657_p13 = scmp.lt.u32.totalorder %s649_s7, %s832_s17 }
 0x26b   : > { %p651_p7 = pnand %p650_p6, %p795_p4 }
 0x26c   : > { %p656_p12 = por %p655_p11, %p654_p10 }
 0x26d   : > { %p652_p9 = pneg %p651_p7 }
 0x26e   : > { %p658_p0 = por %p657_p13, %p656_p12 }
 0x270   : > { %p659_p1 = pnand %p658_p0, %p652_p9 }
 0x272   : > { %662 = shalt.err (!%p659_p1)
}
 0x273   : > { %567 = dma.vmem_to_hbm [thread:$0]  (%p795_p4), %s834_s14, 128, %s832_s17, %s443_s24  }
 0x274 PF: > { %p573_p2 = scmp.ge.s32.totalorder %s713_s23, 2  ;;  %s469_s13 = sand.u32 1, %s693_s18  }
 0x275   : > { %s470_s15 = scalar_lea.sflag [#allocation3], %s469_s13 }
 0x276   : > { %p570_p3 = pnand %p573_p2, %p802_p8 }
 0x278   : > { %688 = dma.done.wait (!%p570_p3), %s470_s15, 128  }
 0x279   : > { %690 = vsyncadd (!%p570_p3), %s470_s15, 4294967168  ;;  %s18_s23 = sadd.s32 1, %s713_s23   ;;  %s887_s18 = smov %s697_s19 }
 0x27a   : > { %p15_p5 = scmp.ge.s32.totalorder %s18_s23, 4   ;;  %s888_s19 = smov %s701_s20 }
 0x27b   : > { %s889_s20 = smov %s808_s6  ;;  %s890_s21 = smov %s709_s22 }
 0x27c   : > { %s891_s22 = smov %s893_s26  ;;  %17 = sbr.rel (!%p15_p5) target bundleno = 4 (0x4), region = 78 }
 0x283   :  { %475 = vsyncpa [#allocation3], 1 }
 0x284   :  { %477 = vsyncpa [#allocation3 + $0x1], 1 }

</bundles_post_ra>
